<compile_context>
chip_gen: v7x
topology: tpu7x:2x2x1
jax: 0.10.0
libtpu: 0.0.40
codegen_flags: <defaults>
</compile_context>

<pallas_src>
import functools

import jax
import jax.numpy as jnp
from jax.experimental import pallas as pl
from jax.experimental.pallas import tpu as pltpu


def _ensemble_kernel(x_ref, wb_ref, bb_ref, wh_ref, bh_ref, o_ref, acc_ref,
                     *, inv_k):
    """Grid = (batch_tiles, kh_chunks).  One step = one (batch tile, kh chunk).

    x_ref  : (TB, Fin)   bf16 -- batch tile of the input (constant along axis 1)
    wb_ref : (Fin, tkh)  bf16 -- backbone-weight chunk (members fused in lanes)
    bb_ref : (1, tkh)    f32  -- backbone-bias chunk
    wh_ref : (tkh, Fp)   bf16 -- head-weight chunk (Fout padded to Fp lanes)
    bh_ref : (1, Fp)     f32  -- mean head bias (padded)
    o_ref  : (TB, Fp)    f32  -- mean-over-heads output tile (written at last chunk)
    acc_ref: (TB, Fp)    f32  -- VMEM accumulator over kh chunks
    """
    m = pl.program_id(1)

    @pl.when(m == 0)
    def _():
        acc_ref[...] = jnp.zeros_like(acc_ref)

    # Backbone chunk (all members in this chunk at once): (TB, Fin) @ (Fin, tkh)
    h = jnp.dot(x_ref[...], wb_ref[...], preferred_element_type=jnp.float32)
    h = jnp.maximum(h + bb_ref[...], 0.0)

    # Head chunk + accumulate the member sum: (TB, tkh) @ (tkh, Fp)
    acc_ref[...] += jnp.dot(h.astype(wh_ref.dtype), wh_ref[...],
                            preferred_element_type=jnp.float32)

    @pl.when(m == pl.num_programs(1) - 1)
    def _():
        # mean over heads = accumulated sum / k, plus mean head bias
        o_ref[...] = (acc_ref[...] * inv_k + bh_ref[...]).astype(o_ref.dtype)


def prepare_params(wb, bb, wh, bh):
    """One-time parameter relayout (do this at param-prep time, NOT per call).

    wb: (k, Fin, H), bb: (k, 1, H), wh: (k, H, Fout), bh: (k, 1, Fout)
    Returns lane-fused, Fout-padded, bf16-cast parameters.
    """
    k, fin, h = wb.shape
    fout = wh.shape[-1]
    kh = k * h
    fp = max(128, pl.cdiv(fout, 128) * 128)

    wb_cat = jnp.transpose(wb, (1, 0, 2)).reshape(fin, kh)      # (Fin, k*H)
    bb_cat = bb.reshape(1, kh)                                   # (1, k*H)
    wh_cat = wh.reshape(kh, fout)                                # (k*H, Fout)
    wh_cat = jnp.pad(wh_cat, ((0, 0), (0, fp - fout)))           # (k*H, Fp)
    bh_mean = jnp.mean(bh.reshape(k, fout), axis=0, keepdims=True)
    bh_mean = jnp.pad(bh_mean, ((0, 0), (0, fp - fout)))         # (1, Fp)

    params = dict(
        wb_cat=wb_cat.astype(jnp.bfloat16),
        bb_cat=bb_cat.astype(jnp.float32),
        wh_cat=wh_cat.astype(jnp.bfloat16),
        bh_mean=bh_mean.astype(jnp.float32),
        k=k, fin=fin, kh=kh, fout=fout, fp=fp,
    )
    return params


def _pick_kh_tile(kh, kh_tile):
    """Largest multiple of 128 that divides kh and is <= kh_tile (else kh)."""
    if kh % 128 != 0:
        return kh
    t = max(128, min((kh_tile // 128) * 128, kh))
    while kh % t != 0:
        t -= 128
    return t


def ensemble_forward(x, params, *, batch_tile=256, kh_tile=256):
    """x: (B, Fin) float32/bfloat16; params: output of prepare_params."""
    B, fin = x.shape
    assert fin == params["fin"]
    kh, fp, fout, k = params["kh"], params["fp"], params["fout"], params["k"]

    # ---- batch tiling (parallel grid axis) ----
    b8 = pl.cdiv(B, 8) * 8
    tb = min(batch_tile, b8)
    # v7x has 2 TensorCores: prefer >= 2 batch tiles when B allows it.
    if b8 // tb < 2 and b8 >= 16:
        tb = pl.cdiv(b8 // 2, 8) * 8
    nb = pl.cdiv(B, tb)
    Bp = nb * tb
    xp = jnp.pad(x, ((0, Bp - B), (0, 0))) if Bp != B else x
    xp = xp.astype(jnp.bfloat16)

    # ---- kh (member*hidden) reduction tiling (arbitrary grid axis, last) ----
    tkh = _pick_kh_tile(kh, kh_tile)
    nk = kh // tkh

    kernel = functools.partial(_ensemble_kernel, inv_k=1.0 / k)

    flops = 2 * Bp * fin * kh + 2 * Bp * kh * fp
    bytes_accessed = int(
        xp.size * 2
        + nb * (params["wb_cat"].size * 2 + params["wh_cat"].size * 2
                + params["bb_cat"].size * 4 + params["bh_mean"].size * 4)
        + Bp * fp * 4)

    out = pl.pallas_call(
        kernel,
        out_shape=jax.ShapeDtypeStruct((Bp, fp), jnp.float32),
        grid_spec=pltpu.PrefetchScalarGridSpec(
            num_scalar_prefetch=0,
            grid=(nb, nk),
            in_specs=[
                pl.BlockSpec((tb, fin), lambda i, m: (i, 0)),    # X batch tile
                pl.BlockSpec((fin, tkh), lambda i, m: (0, m)),   # Wb_cat chunk
                pl.BlockSpec((1, tkh), lambda i, m: (0, m)),     # bb_cat chunk
                pl.BlockSpec((tkh, fp), lambda i, m: (m, 0)),    # Wh_cat chunk
                pl.BlockSpec((1, fp), lambda i, m: (0, 0)),      # mean head bias
            ],
            out_specs=pl.BlockSpec((tb, fp), lambda i, m: (i, 0)),
            scratch_shapes=[pltpu.VMEM((tb, fp), jnp.float32)],  # member-sum acc
        ),
        compiler_params=pltpu.CompilerParams(
            dimension_semantics=("parallel", "arbitrary")),
        cost_estimate=pl.CostEstimate(flops=flops, transcendentals=0,
                                      bytes_accessed=bytes_accessed),
    )(xp, params["wb_cat"], params["bb_cat"], params["wh_cat"],
      params["bh_mean"])

    return out[:B, :fout]


def reference_forward(x, wb, bb, wh, bh):
    """Plain-JAX f32 mirror of the PyTorch forward (mean aggregation, eval mode)."""
    k = wb.shape[0]
    xk = jnp.broadcast_to(x[:, None, :], (x.shape[0], k, x.shape[1]))
    h = jnp.maximum(
        jnp.einsum('bki,kih->bkh', xk, wb, precision='highest') + bb[:, 0][None],
        0.0)
    p = jnp.einsum('bkh,kho->bko', h, wh, precision='highest') + bh[:, 0][None]
    return p.mean(axis=1)


if __name__ == "__main__":
    # Small, module-consistent sizes.
    batch = 8
    in_features = 16
    hidden = 32            # hidden_sizes[-1]
    out_features = 8
    k = 32

    key = jax.random.PRNGKey(0)
    kx, kwb, kbb, kwh, kbh = jax.random.split(key, 5)

    x = jax.random.normal(kx, (batch, in_features), dtype=jnp.float32)
    wb = 0.05 * jax.random.normal(kwb, (k, in_features, hidden), jnp.float32)
    bb = 0.05 * jax.random.normal(kbb, (k, 1, hidden), jnp.float32)
    wh = 0.05 * jax.random.normal(kwh, (k, hidden, out_features), jnp.float32)
    bh = 0.05 * jax.random.normal(kbh, (k, 1, out_features), jnp.float32)

    params = prepare_params(wb, bb, wh, bh)      # one-time relayout + bf16 cast
    out = ensemble_forward(x, params)
    out = jax.block_until_ready(out)

    ref = reference_forward(x, wb, bb, wh, bh)
    assert out.shape == (batch, out_features)
    # bf16 inputs/weights with f32 accumulation vs f32 reference -> looser tol.
    assert jnp.allclose(out, ref, atol=2e-2, rtol=2e-2), "mismatch vs reference"

    print("KERNEL_OK")
</pallas_src>

<mosaic_0001>
module attributes {stable_mosaic.version = 11 : i64} {
  func.func @_ensemble_kernel(%arg0: i32, %arg1: i32, %arg2: memref<8x16xbf16, #tpu.memory_space<vmem>>, %arg3: memref<16x256xbf16, #tpu.memory_space<vmem>>, %arg4: memref<1x256xf32, #tpu.memory_space<vmem>>, %arg5: memref<256x128xbf16, #tpu.memory_space<vmem>>, %arg6: memref<1x128xf32, #tpu.memory_space<vmem>>, %arg7: memref<8x128xf32, #tpu.memory_space<vmem>>, %arg8: memref<8x128xf32, #tpu.memory_space<vmem>>) attributes {dimension_semantics = [#tpu.dimension_semantics<parallel>, #tpu.dimension_semantics<arbitrary>], iteration_bounds = array<i64: 1, 4>, scalar_prefetch = 0 : i64, scratch_operands = 1 : i64, tpu.core_type = #tpu.core_type<tc>, window_params = [{transform_indices = @transform_0, window_bounds = array<i64: 8, 16>}, {transform_indices = @transform_1, window_bounds = array<i64: 16, 256>}, {transform_indices = @transform_2, window_bounds = array<i64: 1, 256>}, {transform_indices = @transform_3, window_bounds = array<i64: 256, 128>}, {pipeline_mode = #tpu.pipeline_mode<synchronous>, transform_indices = @transform_4, window_bounds = array<i64: 1, 128>}, {transform_indices = @transform_5, window_bounds = array<i64: 8, 128>}]} {
    %c0_i32 = arith.constant 0 : i32
    %0 = arith.cmpi eq, %arg1, %c0_i32 : i32
    %1 = arith.extui %0 : i1 to i32
    %c0_i32_0 = arith.constant 0 : i32
    %2 = arith.cmpi ne, %1, %c0_i32_0 : i32
    scf.if %2 {
      %cst_15 = arith.constant 0.000000e+00 : f32
      %20 = vector.broadcast %cst_15 : f32 to vector<8x128xf32>
      %c0_16 = arith.constant 0 : index
      %c0_17 = arith.constant 0 : index
      %21 = vector.load %arg8[%c0_16, %c0_17] : memref<8x128xf32, #tpu.memory_space<vmem>>, vector<8x128xf32>
      tpu.vector_store %arg8[%c0_16, %c0_17], %20 {strides = array<i32>} : memref<8x128xf32, #tpu.memory_space<vmem>>, vector<8x128xf32>,
    } else {
    }
    %c0 = arith.constant 0 : index
    %c0_1 = arith.constant 0 : index
    %3 = vector.load %arg2[%c0, %c0_1] : memref<8x16xbf16, #tpu.memory_space<vmem>>, vector<8x16xbf16>
    %c0_2 = arith.constant 0 : index
    %c0_3 = arith.constant 0 : index
    %4 = vector.load %arg3[%c0_2, %c0_3] : memref<16x256xbf16, #tpu.memory_space<vmem>>, vector<16x256xbf16>
    %cst = arith.constant dense<0.000000e+00> : vector<8x256xf32>
    %5 = tpu.matmul %3, %4, %cst {dimension_numbers = #tpu.dot_dimension_numbers<[1], [0], [0], [1], [0, 0, 1, 1], [], []>} : vector<8x16xbf16>, vector<16x256xbf16>, vector<8x256xf32> -> vector<8x256xf32>
    %c0_4 = arith.constant 0 : index
    %c0_5 = arith.constant 0 : index
    %6 = vector.load %arg4[%c0_4, %c0_5] : memref<1x256xf32, #tpu.memory_space<vmem>>, vector<1x256xf32>
    %7 = vector.broadcast %6 : vector<1x256xf32> to vector<8x256xf32>
    %8 = arith.addf %5, %7 : vector<8x256xf32>
    %cst_6 = arith.constant 0.000000e+00 : f32
    %9 = vector.broadcast %cst_6 : f32 to vector<8x256xf32>
    %10 = arith.maximumf %8, %9 : vector<8x256xf32>
    %c0_7 = arith.constant 0 : index
    %c0_8 = arith.constant 0 : index
    %11 = vector.load %arg8[%c0_7, %c0_8] : memref<8x128xf32, #tpu.memory_space<vmem>>, vector<8x128xf32>
    %12 = arith.truncf %10 : vector<8x256xf32> to vector<8x256xbf16>
    %c0_9 = arith.constant 0 : index
    %c0_10 = arith.constant 0 : index
    %13 = vector.load %arg5[%c0_9, %c0_10] : memref<256x128xbf16, #tpu.memory_space<vmem>>, vector<256x128xbf16>
    %cst_11 = arith.constant dense<0.000000e+00> : vector<8x128xf32>
    %14 = tpu.matmul %12, %13, %cst_11 {dimension_numbers = #tpu.dot_dimension_numbers<[1], [0], [0], [1], [0, 0, 1, 1], [], []>} : vector<8x256xbf16>, vector<256x128xbf16>, vector<8x128xf32> -> vector<8x128xf32>
    %15 = arith.addf %11, %14 : vector<8x128xf32>
    %c0_12 = arith.constant 0 : index
    %c0_13 = arith.constant 0 : index
    %16 = vector.load %arg8[%c0_12, %c0_13] : memref<8x128xf32, #tpu.memory_space<vmem>>, vector<8x128xf32>
    tpu.vector_store %arg8[%c0_12, %c0_13], %15 {strides = array<i32>} : memref<8x128xf32, #tpu.memory_space<vmem>>, vector<8x128xf32>,
    %c3_i32 = arith.constant 3 : i32
    %17 = arith.cmpi eq, %arg1, %c3_i32 : i32
    %18 = arith.extui %17 : i1 to i32
    %c0_i32_14 = arith.constant 0 : i32
    %19 = arith.cmpi ne, %18, %c0_i32_14 : i32
    scf.if %19 {
      %c0_15 = arith.constant 0 : index
      %c0_16 = arith.constant 0 : index
      %20 = vector.load %arg8[%c0_15, %c0_16] : memref<8x128xf32, #tpu.memory_space<vmem>>, vector<8x128xf32>
      %cst_17 = arith.constant 3.125000e-02 : f32
      %21 = vector.broadcast %cst_17 : f32 to vector<8x128xf32>
      %22 = arith.mulf %20, %21 : vector<8x128xf32>
      %c0_18 = arith.constant 0 : index
      %c0_19 = arith.constant 0 : index
      %23 = vector.load %arg6[%c0_18, %c0_19] : memref<1x128xf32, #tpu.memory_space<vmem>>, vector<1x128xf32>
      %24 = vector.broadcast %23 : vector<1x128xf32> to vector<8x128xf32>
      %25 = arith.addf %22, %24 : vector<8x128xf32>
      %c0_20 = arith.constant 0 : index
      %c0_21 = arith.constant 0 : index
      %26 = vector.load %arg7[%c0_20, %c0_21] : memref<8x128xf32, #tpu.memory_space<vmem>>, vector<8x128xf32>
      tpu.vector_store %arg7[%c0_20, %c0_21], %25 {strides = array<i32>} : memref<8x128xf32, #tpu.memory_space<vmem>>, vector<8x128xf32>,
    } else {
    }
    return
  }
  func.func @transform_0(%arg0: i32, %arg1: i32) -> (i32, i32) {
    %c0_i32 = arith.constant 0 : i32
    %c0_i32_0 = arith.constant 0 : i32
    return %arg0, %c0_i32 : i32, i32
  }
  func.func @transform_1(%arg0: i32, %arg1: i32) -> (i32, i32) {
    %c0_i32 = arith.constant 0 : i32
    %c0_i32_0 = arith.constant 0 : i32
    return %c0_i32, %arg1 : i32, i32
  }
  func.func @transform_2(%arg0: i32, %arg1: i32) -> (i32, i32) {
    %c0_i32 = arith.constant 0 : i32
    %c0_i32_0 = arith.constant 0 : i32
    return %c0_i32, %arg1 : i32, i32
  }
  func.func @transform_3(%arg0: i32, %arg1: i32) -> (i32, i32) {
    %c0_i32 = arith.constant 0 : i32
    %c0_i32_0 = arith.constant 0 : i32
    return %arg1, %c0_i32 : i32, i32
  }
  func.func @transform_4(%arg0: i32, %arg1: i32) -> (i32, i32) {
    %c0_i32 = arith.constant 0 : i32
    %c0_i32_0 = arith.constant 0 : i32
    %c0_i32_1 = arith.constant 0 : i32
    return %c0_i32, %c0_i32_0 : i32, i32
  }
  func.func @transform_5(%arg0: i32, %arg1: i32) -> (i32, i32) {
    %c0_i32 = arith.constant 0 : i32
    %c0_i32_0 = arith.constant 0 : i32
    return %arg0, %c0_i32 : i32, i32
  }
}

</mosaic_0001>

<bundles_post_ra>
// kernel: tpu_custom_call.1
= control target key start
LH: loop header
LB: loop body
LE: loop exit
PB: predicated region body
PF: predicated region fallthrough
CT: control target
= control target key end

     0   :  { %s1448_s0 = inlined_call_operand.hbm [shape: bf16[8,16], index: 0, kind: input, shape index: {}]   ;;  %s1449_s1 = inlined_call_operand.hbm [shape: bf16[16,1024], index: 1, kind: input, shape index: {}]   ;;  %s1450_s2 = inlined_call_operand.hbm [shape: f32[1,1024], index: 2, kind: input, shape index: {}]   ;;  %s1451_s3 = inlined_call_operand.hbm [shape: bf16[1024,128], index: 3, kind: input, shape index: {}]   ;;  %s1452_s4 = inlined_call_operand.vmem [shape: f32[1,128], index: 4, kind: input, shape index: {}]   ;;  %s1453_s5 = inlined_call_operand.hbm [shape: f32[8,128], index: 5, kind: output, shape index: {}]  }
   0x1   :  { %1462 = sst [smem:[#allocation18_spill]] %s1449_s1 }
   0x2   :  { %10 = vsyncpa [#allocation4], 0 }
   0x3   :  { %11 = vsyncpa [#allocation7], 0 }
   0x4   :  { %13 = vsyncpa [#allocation7 + $0x1], 0 }
   0x5   :  { %14 = vsyncpa [#allocation10], 0 }
   0x6   :  { %16 = vsyncpa [#allocation10 + $0x1], 0 }
   0x7   :  { %17 = vsyncpa [#allocation5], 0  ;;  %s1167_s18 = smov 0   ;;  %s1169_s19 = smov 0  }
   0x8   :  { %s1171_s20 = smov 0   ;;  %s1173_s21 = smov 0  }
   0x9   :  { %s1175_s22 = smov 0   ;;  %s1177_s23 = smov 0  }
   0xa LB: > { %s32_s24 = sadd.s32 1, %s1119_s22  ;;  %s68_s25 = sadd.s32 1, %s1111_s20  ;;  %s1123_s23 = sphi %s1177_s23, %s23_s23   ;;  %s1119_s22 = sphi %s1175_s22, %s1483_s22   ;;  %s1115_s21 = sphi %s1173_s21, %s1482_s21   ;;  %s1111_s20 = sphi %s1171_s20, %s1481_s20   ;;  %s1107_s19 = sphi %s1169_s19, %s1480_s19   ;;  %s1103_s18 = sphi %s1167_s18, %s1479_s18  }
   0xb   : > { %p33_p0 = scmp.ge.s32.totalorder %s32_s24, 4  ;;  %p75_p1 = scmp.ne.s32.totalorder %s1111_s20, %s1107_s19 }
   0xc   : > { %p76_p2 = scmp.eq.s32.totalorder %s1123_s23, 0  ;;  %p837_p4 = scmp.lt.s32.totalorder %s1123_s23, 4 }
   0xd   : > { %s1485_s24 = smov (%p33_p0, %s32_s24), 0  ;;  %s220_s27 = sand.u32 1, %s1123_s23  }
   0xe   : > { %1463 = sst [smem:[#allocation16_spill]] %s1485_s24  ;;  %p77_p3 = por %p76_p2, %p75_p1 }
   0xf   : > { %s65_s26 = ssub.s32 %s1119_s22, %s1485_s24  ;;  %s1209_s28 = sand.u32 1, %s1111_s20  }
  0x10   : > { %p66_p5 = scmp.eq.s32.totalorder %s65_s26, 0  ;;  %s783_s29 = sshll.u32 %s1119_s22, 7 }
  0x11   : > { %s743_s6 = sshll.u32 %s1209_s28, 4  ;;  %s1465_s1 = sld [smem:[#allocation18_spill]] }
  0x12   : > { %s1213_s30 = scalar_select %p66_p5, %s1111_s20, %s68_s25  }
  0x13   : > { %p1221_p6 = pnand %p837_p4, %p77_p3  ;;  %s224_s11 = scalar_lea.vmem [#allocation6], %s743_s6 }
  0x14   : > { %1464 = sst [smem:[#allocation17_spill]] %s1213_s30  ;;  %s231_s12 = sshll.u32 %s224_s11, 4  ;;  %s1225_s12 = int_to_ptr.vmem [resolvable:$true] %s231_s12 }
  0x15   : > { %s1466_s10 = scalar_select %p1221_p6, 1, 0 }
  0x16   : > { %s1227_s13 = scalar_lea.sflag [#allocation7], %s220_s27  ;;  %p1233_p8 = pneg %p1221_p6 }
  0x17   : > { %s1219_s9 = scalar_lea.hbm %s1465_s1, %s783_s29  ;;  %s922_s25 = scalar_lea.hbm %s1465_s1, 1024 }
  0x18   : > { %s917_s14 = scalar_lea.hbm %s1219_s9, 256  ;;  %p923_p11 = scmp.lt.u32.totalorder %s1219_s9, %s1465_s1 }
  0x19   : > { %p918_p7 = scmp.ne.s32.totalorder %s1219_s9, %s917_s14  ;;  %p924_p12 = scmp.lt.u32.totalorder %s922_s25, %s917_s14 }
  0x1a   : > { %s1467_s15 = scalar_select %p1233_p8, 1, 0 }
  0x1b   : > { %p920_p9 = pnand %p1233_p8, %p918_p7  ;;  %p925_p13 = por %p924_p12, %p923_p11 }
  0x1c   : > { %p926_p0 = scmp.lt.u32.totalorder %s917_s14, %s1219_s9 }
  0x1d   : > { %p921_p10 = pneg %p920_p9 }
  0x1e   : > { %p927_p1 = por %p926_p0, %p925_p13 }
  0x20   : > { %p928_p2 = pnand %p927_p1, %p921_p10 }
  0x22   : > { %931 = shalt.err (!%p928_p2)
}
  0x23   : > { %s932_s27 = scalar_lea.vmem %s1225_s12, 256  ;;  %s1125_s6 = smov [#allocation6]  }
  0x24   : > { %p933_p3 = scmp.ne.s32.totalorder %s1225_s12, %s932_s27  ;;  %s937_s7 = sshll.u32 %s1125_s6, 4  ;;  %s938_s7 = int_to_ptr.vmem [resolvable:$false] %s937_s7 }
  0x25   : > { %s939_s8 = scalar_lea.vmem %s938_s7, 512  ;;  %p940_p7 = scmp.lt.s32.totalorder %s1225_s12, %s938_s7 }
  0x26   : > { %p935_p4 = pnand %p933_p3, %p1233_p8  ;;  %p941_p9 = scmp.lt.s32.totalorder %s939_s8, %s932_s27 }
  0x28   : > { %p936_p5 = pneg %p935_p4  ;;  %p942_p11 = por %p941_p9, %p940_p7 }
  0x2a   : > { %p943_p12 = pnand %p942_p11, %p936_p5 }
  0x2c   : > { %946 = shalt.err (!%p943_p12)
}
  0x2d   : > { %s1126_s11 = smov 512   ;;  %s1127_s14 = smov 128  }
  0x2e   : > { %s1128_s16 = smov 8   ;;  %s1258_s17 = sadd.s32 4294967295, %s1123_s23  }
  0x2f   : > { %829 = dma.hbm_to_vmem [thread:$0]  (!%p1221_p6), %s1219_s9, 256, %s1225_s12, %s1227_s13, %s1126_s11, %s1127_s14, %s1128_s16  }
  0x30   : > { %p81_p10 = scmp.ne.s32.totalorder %s1107_s19, %s1103_s18  ;;  %p1455_p13 = scmp.eq.s32.totalorder %s1258_s17, 0 }
  0x31   : > { %p740_p0 = scmp.ge.s32.totalorder %s1123_s23, 1  ;;  %p191_p1 = scmp.lt.s32.totalorder %s1123_s23, 5 }
  0x32   : > { %p1267_p2 = por %p1455_p13, %p81_p10  ;;  %s1129_s9 = smov [#allocation3]  }
  0x33   : > { %p1271_p3 = pnand %p740_p0, %p191_p1  ;;  %s206_s12 = sshll.u32 %s1129_s9, 4  ;;  %s207_s12 = int_to_ptr.vmem [resolvable:$true] %s206_s12 }
  0x34   : > { %s1468_s25 = scalar_select %p1267_p2, 1, 0 }
  0x35   : > { %s1469_s26 = scalar_select %p1271_p3, 1, 0 }
  0x36   : > { %s746_s29 = sshll.u32 %s1209_s28, 1  ;;  %p822_p4 = pneg %p1271_p3 }
  0x37   : > { %s784_s18 = sshll.u32 %s1119_s22, 5  ;;  %s245_s27 = scalar_lea.vmem [#allocation8], %s746_s29 }
  0x38   : > { %s253_s6 = sshll.u32 %s245_s27, 4  ;;  %p1281_p5 = pnand %p822_p4, %p1455_p13  ;;  %s1290_s6 = int_to_ptr.vmem [resolvable:$true] %s253_s6 }
  0x39   : > { %s1288_s14 = scalar_lea.hbm %s1450_s2, %s784_s18  ;;  %s749_s16 = sshll.u32 %s1209_s28, 7 }
  0x3a   : > { %s947_s24 = scalar_lea.hbm %s1448_s0, 64  ;;  %p949_p9 = pneg %p1281_p5 }
  0x3b   : > { %p948_p7 = scmp.ne.s32.totalorder %s1448_s0, %s947_s24  ;;  %p954_p10 = scmp.lt.u32.totalorder %s947_s24, %s1448_s0 }
  0x3d   : > { %p950_p11 = pnand %p949_p9, %p948_p7 }
  0x3f   : > { %p951_p12 = pneg %p950_p11 }
  0x41   : > { %p956_p0 = pnand %p954_p10, %p951_p12 }
  0x43   : > { %959 = shalt.err (!%p956_p0)
}
  0x44   : > { %s960_s18 = scalar_lea.vmem %s207_s12, 64  ;;  %p968_p2 = scmp.lt.s32.totalorder %s207_s12, %s207_s12 }
  0x45   : > { %p961_p1 = scmp.ne.s32.totalorder %s207_s12, %s960_s18  ;;  %p969_p3 = scmp.lt.s32.totalorder %s960_s18, %s960_s18 }
  0x47   : > { %p963_p4 = pnand %p961_p1, %p949_p9  ;;  %p970_p6 = por %p969_p3, %p968_p2 }
  0x49   : > { %p964_p13 = pneg %p963_p4 }
  0x4b   : > { %p971_p8 = pnand %p970_p6, %p964_p13 }
  0x4d   : > { %974 = shalt.err (!%p971_p8)
}
  0x4e   : > { %825 = dma.hbm_to_vmem [thread:$0]  (!%p1281_p5), %s1448_s0, 64, %s207_s12, [#allocation4]  }
  0x4f   : > { %s975_s24 = scalar_lea.hbm %s1288_s14, 32  ;;  %p1471_p9 = scmp.ne.s32.totalorder %s1467_s15, 0 }
  0x50   : > { %p976_p7 = scmp.ne.s32.totalorder %s1288_s14, %s975_s24  ;;  %s980_s29 = scalar_lea.hbm %s1450_s2, 128 }
  0x51   : > { %p981_p6 = scmp.lt.u32.totalorder %s1288_s14, %s1450_s2  ;;  %p982_p8 = scmp.lt.u32.totalorder %s980_s29, %s975_s24 }
  0x52   : > { %p978_p11 = pnand %p976_p7, %p1471_p9  ;;  %p984_p2 = scmp.lt.u32.totalorder %s975_s24, %s1288_s14 }
  0x53   : > { %p983_p13 = por %p982_p8, %p981_p6 }
  0x54   : > { %p979_p12 = pneg %p978_p11 }
  0x55   : > { %p985_p3 = por %p984_p2, %p983_p13 }
  0x57   : > { %p986_p10 = pnand %p985_p3, %p979_p12 }
  0x59   : > { %989 = shalt.err (!%p986_p10)
}
  0x5a   : > { %s990_s12 = scalar_lea.vmem %s1290_s6, 32  ;;  %s1130_s8 = smov [#allocation8]  }
  0x5b   : > { %p991_p5 = scmp.ne.s32.totalorder %s1290_s6, %s990_s12  ;;  %s995_s18 = sshll.u32 %s1130_s8, 4  ;;  %s996_s18 = int_to_ptr.vmem [resolvable:$false] %s995_s18 }
  0x5c   : > { %s997_s1 = scalar_lea.vmem %s996_s18, 64  ;;  %p998_p4 = scmp.lt.s32.totalorder %s1290_s6, %s996_s18 }
  0x5d   : > { %p993_p0 = pnand %p991_p5, %p1471_p9  ;;  %p999_p7 = scmp.lt.s32.totalorder %s997_s1, %s990_s12 }
  0x5f   : > { %p994_p1 = pneg %p993_p0  ;;  %p1000_p11 = por %p999_p7, %p998_p4 }
  0x61   : > { %p1001_p6 = pnand %p1000_p11, %p994_p1 }
  0x63   : > { %1004 = shalt.err (!%p1001_p6)
}
  0x64   : > { %p1472_p12 = scmp.ne.s32.totalorder %s1466_s10, 0  ;;  %s785_s11 = sshll.u32 %s1119_s22, 11 }
  0x65   : > { %s1335_s9 = scalar_lea.hbm %s1451_s3, %s785_s11  ;;  %s264_s29 = scalar_lea.vmem [#allocation9], %s749_s16 }
  0x66   : > { %832 = dma.hbm_to_vmem [thread:$0]  (!%p1472_p12), %s1288_s14, 32, %s1290_s6, %s1227_s13  }
  0x67   : > { %s271_s27 = sshll.u32 %s264_s29, 4  ;;  %s261_s7 = scalar_lea.sflag [#allocation10], %s1209_s28  ;;  %s1339_s27 = int_to_ptr.vmem [resolvable:$true] %s271_s27 }
  0x68   : > { %s1005_s12 = scalar_lea.hbm %s1335_s9, 2048  ;;  %s1010_s14 = scalar_lea.hbm %s1451_s3, 8192 }
  0x69   : > { %p1006_p8 = scmp.ne.s32.totalorder %s1335_s9, %s1005_s12  ;;  %p1011_p3 = scmp.lt.u32.totalorder %s1335_s9, %s1451_s3 }
  0x6a   : > { %p1012_p10 = scmp.lt.u32.totalorder %s1010_s14, %s1005_s12  ;;  %p1014_p0 = scmp.lt.u32.totalorder %s1005_s12, %s1335_s9 }
  0x6b   : > { %p1008_p13 = pnand %p1006_p8, %p1471_p9 }
  0x6c   : > { %p1013_p5 = por %p1012_p10, %p1011_p3 }
  0x6d   : > { %p1009_p2 = pneg %p1008_p13 }
  0x6e   : > { %p1015_p1 = por %p1014_p0, %p1013_p5 }
  0x70   : > { %p1016_p4 = pnand %p1015_p1, %p1009_p2 }
  0x72   : > { %1019 = shalt.err (!%p1016_p4)
}
  0x73   : > { %s1020_s16 = scalar_lea.vmem %s1339_s27, 2048  ;;  %s1131_s1 = smov [#allocation9]  }
  0x74   : > { %p1021_p7 = scmp.ne.s32.totalorder %s1339_s27, %s1020_s16  ;;  %s1025_s11 = sshll.u32 %s1131_s1, 4  ;;  %s1026_s11 = int_to_ptr.vmem [resolvable:$false] %s1025_s11 }
  0x75   : > { %s1027_s24 = scalar_lea.vmem %s1026_s11, 4096  ;;  %p1028_p8 = scmp.lt.s32.totalorder %s1339_s27, %s1026_s11 }
  0x76   : > { %p1023_p11 = pnand %p1021_p7, %p1471_p9  ;;  %p1029_p13 = scmp.lt.s32.totalorder %s1027_s24, %s1020_s16 }
  0x78   : > { %p1024_p6 = pneg %p1023_p11  ;;  %p1030_p3 = por %p1029_p13, %p1028_p8 }
  0x7a   : > { %p1031_p10 = pnand %p1030_p3, %p1024_p6 }
  0x7c   : > { %1034 = shalt.err (!%p1031_p10)
}
  0x7d   : > { %s1132_s30 = smov 64   ;;  %s1133_s29 = smov 4  }
  0x7e   : > { %835 = dma.hbm_to_vmem [thread:$0]  (!%p1472_p12), %s1335_s9, 2048, %s1339_s27, %s261_s7, %s1132_s30, %s1132_s30, %s1133_s29  }
  0x7f   : > { %p1473_p9 = scmp.ne.s32.totalorder %s1469_s26, 0 }
  0x80   : > { %p1474_p2 = scmp.eq.s32.totalorder (!%p1473_p9), %s1258_s17, 0 }
  0x81   : > { %283 = sbr.rel (%p1473_p9) target bundleno = 635 (0x27b), region = 40 }
  0x88   : > { %1086 = dma.done.wait (%p1474_p2), [#allocation4], 64   ;;  %p1475_p5 = pmov %p1474_p2 }
  0x89   : > { %s289_s15 = sand.u32 1, %s1258_s17   ;;  %s291_s12 = sand.u32 1, %s1107_s19  }
  0x8a   : > { %1088 = vsyncadd (%p1475_p5), [#allocation4], 4294967232  ;;  %s754_s13 = sshll.u32 %s291_s12, 4  ;;  %s290_s6 = scalar_lea.sflag [#allocation7], %s289_s15 }
  0x8b   : > { %s293_s14 = scalar_lea.vmem [#allocation6], %s754_s13  ;;  %p1476_p0 = scmp.ne.s32.totalorder %s1468_s25, 0 }
  0x8d   : > { %1090 = dma.done.wait (%p1476_p0), %s290_s6, 288  }
  0x8e   : > { %1092 = vsyncadd (%p1476_p0), %s290_s6, 4294967008  ;;  %s755_s28 = sshll.u32 %s291_s12, 1  ;;  %s756_s10 = sshll.u32 %s291_s12, 7 }
  0x8f   : > { %s1377_s26 = scalar_lea.vmem [#allocation8], %s755_s28  ;;  %s308_s9 = scalar_lea.sflag [#allocation10], %s291_s12 }
  0x90   : > { %s1379_s27 = scalar_lea.vmem [#allocation9], %s756_s10 }
  0x91   : > { %1094 = dma.done.wait (%p1476_p0), %s308_s9, 2048  }
  0x92   : > { %1096 = vsyncadd (%p1476_p0), %s308_s9, 4294965248  ;;  %p757_p12 = scmp.ne.s32.totalorder %s1115_s21, 0 }
  0x93   : > { %v1134_v0 = vmov (!%p757_p12), 0.0  }
  0x94   : > { %350 = sbr.rel (%p757_p12) target bundleno = 155 (0x9b), region = 60  ;;  %351 = vst [vmem:[#allocation2] sm:$0xff] (!%p757_p12), %v1134_v0 }
  0x9b PF: > { %v898_v1 = vld [vmem:[%s293_s14 + $0x4] ss:$8 sps:$4 sm:$0xff]   ;;  %v900_v2 = vld [vmem:[%s293_s14] ss:$8 sps:$4 sm:$0xff]   ;;  %v1135_v3 = vmov 0   ;;  %vm377_vm0 = vcmask 130048   ;;  %v357_v21 = vlaneseq }
  0x9c   : > { %413 = vmatprep.mubr.bf16.mxu0 %v1135_v3  ;;  %v352_v4 = vld [vmem:[#allocation3] sm:$0xf]  ;;  %381 = vmatprep.subr.bf16.mxu0 %v898_v1  ;;  %v901_v5 = vld [vmem:[%s1379_s27 + $0x40] sm:$0xff]   ;;  %v903_v7 = vld [vmem:[%s1379_s27 + $0x48] sm:$0xff]   ;;  %p777_p1 = scmp.ne.s32.totalorder %s1115_s21, 3 }
  0x9d   : > { %382 = vmatpush1.bf16.msra.mxu0 %v900_v2  ;;  %v902_v6 = vld [vmem:[%s1379_s27] sm:$0xff]   ;;  %786 = vmatprep.subr.bf16.mxu1 %v901_v5  ;;  %v904_v8 = vld [vmem:[%s1379_s27 + $0x8] sm:$0xff]   ;;  %v905_v9 = vld [vmem:[%s1379_s27 + $0x50] sm:$0xff]   ;;  %v358_v22 = vshrl.u32 %v357_v21, 7 }
  0x9e   : > { %787 = vmatpush3.bf16.msra.mxu1 %v902_v6  ;;  %v906_v10 = vld [vmem:[%s1379_s27 + $0x10] sm:$0xff]   ;;  %v907_v11 = vld [vmem:[%s1379_s27 + $0x58] sm:$0xff]   ;;  %v909_v13 = vld [vmem:[%s1379_s27 + $0x60] sm:$0xff]  }
  0x9f   : > { %788 = vmatprep.subr.bf16.mxu1 %v903_v7  ;;  %v908_v12 = vld [vmem:[%s1379_s27 + $0x18] sm:$0xff]   ;;  %v910_v14 = vld [vmem:[%s1379_s27 + $0x20] sm:$0xff]   ;;  %v911_v15 = vld [vmem:[%s1379_s27 + $0x68] sm:$0xff]   ;;  %v359_v23 = vsub.s32 0, %v358_v22  ;;  %v363_v25 = vsub.s32 1, %v358_v22 }
  0xa0   : > { %760 = vmatmul.mubr.msk.bf16.vlgmr.msra.gmra.mrb[0].mxu0 %vm377_vm0, %v352_v4  ;;  %v912_v16 = vld [vmem:[%s1379_s27 + $0x28] sm:$0xff]   ;;  %v913_v17 = vld [vmem:[%s1379_s27 + $0x70] sm:$0xff]   ;;  %v915_v19 = vld [vmem:[%s1379_s27 + $0x78] sm:$0xff]  }
  0xa1   : > { %v914_v18 = vld [vmem:[%s1379_s27 + $0x30] sm:$0xff]   ;;  %v916_v20 = vld [vmem:[%s1379_s27 + $0x38] sm:$0xff]  }
  0xa2   : > { %789 = vmatpush3.bf16.msra.mxu1 %v904_v8  ;;  %v355_v24 = vld [vmem:[%s1377_s26] sm:$0x3]  ;;  %v424_v39 = vld [vmem:[#allocation2] sm:$0xff] }
  0xa3   : > { %790 = vmatprep.subr.bf16.mxu1 %v905_v9  ;;  %v360_v26 = vrot.slane %v355_v24, %v359_v23  ;;  %v364_v27 = vrot.slane %v355_v24, %v363_v25  ;;  %v778_v46 = vld [vmem:[%s1452_s4] ss:$0 sm:$0xff] (!%p777_p1) }
  0xa6   : > { %791 = vmatpush3.bf16.msra.mxu1 %v906_v10 }
  0xa7   : > { %792 = vmatprep.subr.bf16.mxu1 %v907_v11 }
  0xaa   : > { %793 = vmatpush3.bf16.msra.mxu1 %v908_v12 }
  0xab   : > { %794 = vmatprep.subr.bf16.mxu1 %v909_v13 }
  0xae   : > { %795 = vmatpush3.bf16.msra.mxu1 %v910_v14 }
  0xaf   : > { %796 = vmatprep.subr.bf16.mxu1 %v911_v15 }
  0xb2   : > { %797 = vmatpush3.bf16.msra.mxu1 %v912_v16 }
  0xb3   : > { %798 = vmatprep.subr.bf16.mxu1 %v913_v17 }
  0xb6   : > { %799 = vmatpush3.bf16.msra.mxu1 %v914_v18 }
  0xb7   : > { %800 = vmatprep.subr.bf16.mxu1 %v915_v19 }
  0xba   : > { %801 = vmatpush3.bf16.msra.mxu1 %v916_v20 }
 0x173   : > { %v415_v28 = vpop.f32.mrb[0].mxu0 }
 0x174   : > { %v416_v29 = vadd.f32 %v415_v28, %v360_v26  ;;  %v417_v30 = vpop.f32.mrb[1].mxu0 }
 0x175   : > { %v418_v31 = vadd.f32 %v417_v30, %v364_v27  ;;  %v419_v32 = vpop.f32.mrb[2].mxu0 }
 0x176   : > { %v422_v33 = vmax.f32 %v416_v29, 0.0  ;;  %v420_v34 = vpop.f32.mrb[3].mxu0 }
 0x177   : > { %v423_v35 = vmax.f32 %v418_v31, 0.0 }
 0x178   : > { %v425_v37 = vpack.c.bf16 %v422_v33, %v422_v33 }
 0x179   : > { %v426_v36 = vpack.c.bf16 %v423_v35, %v423_v35 }
 0x17b   : > { %587 = vmatprep.mubr.bf16.mxu1 %v426_v36 }
 0x17c   : > { %588 = vmatmul.mubr.bf16.vlgmr.msra.gmra.mrb[0].mxu1 %v425_v37 }
 0x24f   : > { %v802_v38 = vpop.f32.mrb[0].mxu1  ;;  %600 = sbr.rel (%p777_p1) target bundleno = 610 (0x262), region = 64 }
 0x250   : > { %v803_v40 = vpop.f32.mrb[1].mxu1 }
 0x251   : > { %v804_v41 = vadd.f32 %v803_v40, %v802_v38  ;;  %v805_v42 = vpop.f32.mrb[2].mxu1 }
 0x252   : > { %v806_v43 = vpop.f32.mrb[3].mxu1 }
 0x253   : > { %v595_v44 = vadd.f32 %v804_v41, %v424_v39 }
 0x255   : > { %596 = vst [vmem:[#allocation2] sm:$0xff] %v595_v44 }
 0x25c   : > { %v601_v45 = vld [vmem:[#allocation2] sm:$0xff] }
 0x25d   : > { %v602_v47 = vmul.f32 0.03125, %v601_v45 }
 0x25f   : > { %v610_v48 = vadd.f32 %v778_v46, %v602_v47 }
 0x261   : > { %611 = vst [vmem:[#allocation11] sm:$0xff] %v610_v48 }
 0x262 PF: > { %p839_p4 = scmp.eq.s32.totalorder %s1258_s17, 3  ;;  %s1136_s8 = smov [#allocation11]  }
 0x263   : > { %s621_s18 = sshll.u32 %s1136_s8, 4  ;;  %s622_s18 = int_to_ptr.vmem [resolvable:$true] %s621_s18 }
 0x264   : > { %s1035_s16 = scalar_lea.vmem %s622_s18, 128  ;;  %p1042_p8 = scmp.lt.s32.totalorder %s622_s18, %s622_s18 }
 0x265   : > { %p1036_p7 = scmp.ne.s32.totalorder %s622_s18, %s1035_s16  ;;  %p1043_p13 = scmp.lt.s32.totalorder %s1035_s16, %s1035_s16 }
 0x267   : > { %p1037_p11 = pnand %p1036_p7, %p839_p4  ;;  %p1044_p3 = por %p1043_p13, %p1042_p8 }
 0x269   : > { %p1038_p6 = pneg %p1037_p11 }
 0x26b   : > { %p1045_p10 = pnand %p1044_p3, %p1038_p6 }
 0x26d   : > { %1048 = shalt.err (!%p1045_p10)
}
 0x26e   : > { %s1049_s11 = scalar_lea.hbm %s1453_s5, 128 }
 0x26f   : > { %p1050_p9 = scmp.ne.s32.totalorder %s1453_s5, %s1049_s11  ;;  %p1055_p0 = scmp.lt.u32.totalorder %s1049_s11, %s1453_s5 }
 0x271   : > { %p1051_p2 = pnand %p1050_p9, %p839_p4 }
 0x273   : > { %p1052_p5 = pneg %p1051_p2 }
 0x275   : > { %p1057_p12 = pnand %p1055_p0, %p1052_p5 }
 0x277   : > { %1060 = shalt.err (!%p1057_p12)
}
 0x278   : > { %819 = dma.vmem_to_hbm [thread:$0]  (%p839_p4), %s622_s18, 128, %s1453_s5, [#allocation5]  }
 0x279   : > { %1098 = dma.done.wait (%p839_p4), [#allocation5], 128  }
 0x27a   : > { %1100 = vsyncadd (%p839_p4), [#allocation5], 4294967168 }
 0x27b PF: > { %s23_s23 = sadd.s32 1, %s1123_s23   ;;  %s1477_s6 = sld [smem:[#allocation17_spill]] }
 0x27c   : > { %p20_p1 = scmp.ge.s32.totalorder %s23_s23, 6   ;;  %s1478_s14 = sld [smem:[#allocation16_spill]] }
 0x27d   : > { %s1479_s18 = smov %s1107_s19  ;;  %s1480_s19 = smov %s1111_s20 }
 0x27e   : > { %s1482_s21 = smov %s1119_s22  ;;  %22 = sbr.rel (!%p20_p1) target bundleno = 10 (0xa), region = 116 }
 0x281   : > { %s1481_s20 = smov %s1477_s6 }
 0x282   : > { %s1483_s22 = smov %s1478_s14 }
 0x285   :  { %634 = vsyncpa [#allocation4], 1 }
 0x286   :  { %636 = vsyncpa [#allocation4 + $0x1], 1 }
 0x287   :  { %637 = vsyncpa [#allocation7], 1 }
 0x288   :  { %639 = vsyncpa [#allocation7 + $0x1], 1 }
 0x289   :  { %640 = vsyncpa [#allocation10], 1 }
 0x28a   :  { %642 = vsyncpa [#allocation10 + $0x1], 1 }
 0x28b   :  { %643 = vsyncpa [#allocation5], 1 }
 0x28c   :  { %645 = vsyncpa [#allocation5 + $0x1], 1 }

</bundles_post_ra>
